<compile_context>
chip_gen: v7x
topology: tpu7x:2x2x1
jax: 0.10.0
libtpu: 0.0.40
codegen_flags: <defaults>
</compile_context>

<pallas_src>
import functools

import jax
import jax.numpy as jnp
from jax.experimental import pallas as pl
from jax.experimental.pallas import tpu as pltpu

INPUT_DIM = 388
HIDDEN = 256
HALF = HIDDEN // 2        # 128
HEAD_PAD = 128            # fused head, padded to a lane-dense 128 columns
MAX_TB = 1024             # batch tile (fits comfortably in 32 MiB scoped VMEM)
SINGLE_TILE_MAX = 256     # below this, use one grid step (latency path)


# ---------------------------------------------------------------------------
# Pallas kernel: fused MLP forward (incl. 2-class softmax) for one batch tile.
#   x_ref   : (TB, 388)  f32   -> cast to bf16 in-kernel
#   w*_ref  : bf16 weights (in, out);  b*_ref : f32 biases (1, out)
#   out_ref : (TB, 128) bf16 -- lane 0 = P(action 0), lane 1 = P(action 1),
#             lane 2 = critic value, lanes 3.. = 0
# ---------------------------------------------------------------------------
def actor_critic_kernel(x_ref,
                        w1_ref, b1_ref,
                        w2_ref, b2_ref,
                        w3_ref, b3_ref,
                        wh_ref, bh_ref,
                        out_ref):
    x = x_ref[...].astype(jnp.bfloat16)                               # (TB, 388)

    # Linear(388->256) + LeakyReLU(0.3)
    h = jnp.dot(x, w1_ref[...], preferred_element_type=jnp.float32) + b1_ref[...]
    h = jnp.maximum(h, 0.3 * h)

    # Linear(256->256) + LeakyReLU(0.1)
    h = jnp.dot(h.astype(jnp.bfloat16), w2_ref[...],
                preferred_element_type=jnp.float32) + b2_ref[...]
    h = jnp.maximum(h, 0.1 * h)

    # Linear(256->128) + Tanh
    h = jnp.tanh(
        jnp.dot(h.astype(jnp.bfloat16), w3_ref[...],
                preferred_element_type=jnp.float32) + b3_ref[...]
    )                                                                 # (TB, 128)

    # Fused head: lane 0 = d = logit0-logit1, lane 1 = -d, lane 2 = value.
    head = (jnp.dot(h.astype(jnp.bfloat16), wh_ref[...],
                    preferred_element_type=jnp.float32) + bh_ref[...])  # (TB,128)

    # Element-wise 2-class softmax on lanes 0/1 (EUP; free vs. MXU):
    #   sigmoid(d) = p0,  sigmoid(-d) = p1 = 1 - p0.
    sig = pl.reciprocal(1.0 + jnp.exp(-head), approx=True)
    lane = jax.lax.broadcasted_iota(jnp.int32, head.shape, 1)
    out_ref[...] = jnp.where(lane < 2, sig, head).astype(out_ref.dtype)


# ---------------------------------------------------------------------------
# Deterministic parameter init (orthogonal weights, zero biases, actor bias
# ~ N(0, 0.1)), mirroring the PyTorch __init__ semantics.
# ---------------------------------------------------------------------------
def _orthogonal(key, out_dim, in_dim):
    """Orthogonal matrix of shape (out_dim, in_dim) (PyTorch weight layout)."""
    rows, cols = out_dim, in_dim
    a = jax.random.normal(key, (max(rows, cols), min(rows, cols)), dtype=jnp.float32)
    q, r = jnp.linalg.qr(a)
    q = q * jnp.sign(jnp.diag(r))[None, :]
    if rows < cols:
        q = q.T
    return q[:rows, :cols]


def init_params(key):
    k1, k2, k3, k4, k5, kb = jax.random.split(key, 6)
    # PyTorch layout (out, in) -> transpose to kernel layout (in, out).
    w1 = _orthogonal(k1, HIDDEN, INPUT_DIM).T            # (388, 256)
    w2 = _orthogonal(k2, HIDDEN, HIDDEN).T               # (256, 256)
    w3 = _orthogonal(k3, HALF, HIDDEN).T                 # (256, 128)
    wa = _orthogonal(k4, 2, HALF).T                      # (128, 2)
    wc = _orthogonal(k5, 1, HALF).T                      # (128, 1)

    b1 = jnp.zeros((1, HIDDEN), jnp.float32)
    b2 = jnp.zeros((1, HIDDEN), jnp.float32)
    b3 = jnp.zeros((1, HALF), jnp.float32)
    ba = 0.1 * jax.random.normal(kb, (2,), dtype=jnp.float32)   # actor bias ~N(0,0.1)
    bc = jnp.zeros((1,), jnp.float32)                           # critic bias = 0

    # Fused head, structured for the in-kernel 2-class softmax:
    #   col 0 =  (wa0 - wa1)  -> produces d  = logit0 - logit1
    #   col 1 = -(wa0 - wa1)  -> produces -d (sigmoid(-d) = 1 - sigmoid(d))
    #   col 2 =  wc           -> critic value
    d_w = wa[:, 0] - wa[:, 1]
    d_b = ba[0] - ba[1]
    wh = (jnp.zeros((HALF, HEAD_PAD), jnp.float32)
          .at[:, 0].set(d_w).at[:, 1].set(-d_w).at[:, 2].set(wc[:, 0]))
    bh = (jnp.zeros((1, HEAD_PAD), jnp.float32)
          .at[0, 0].set(d_b).at[0, 1].set(-d_b).at[0, 2].set(bc[0]))

    # bf16 weights (MXU-native), f32 biases (added in the f32 accumulator).
    kernel_params = (w1.astype(jnp.bfloat16), b1,
                     w2.astype(jnp.bfloat16), b2,
                     w3.astype(jnp.bfloat16), b3,
                     wh.astype(jnp.bfloat16), bh)
    # Full-precision, unfused params for the torch-fidelity reference.
    raw_params = (w1, b1, w2, b2, w3, b3, wa, ba[None, :], wc, bc[None, :])
    return kernel_params, raw_params


def _round_up(v, m):
    return ((v + m - 1) // m) * m


def _choose_tile(b):
    """Return (b_pad, TB).  Batch padded to a multiple of 16; for batches
    beyond the latency path the grid has an even number (>=2) of steps so
    both v7x TensorCores get balanced work; TB <= MAX_TB."""
    b16 = max(16, _round_up(b, 16))
    if b16 <= SINGLE_TILE_MAX:
        return b16, b16
    steps = max(2, -(-b16 // MAX_TB))      # ceil div
    if steps % 2:
        steps += 1                         # even -> balanced across 2 TCs
    tb = _round_up(-(-b16 // steps), 16)
    return tb * steps, tb


def _massage_input(x):
    """Match the torch module's rank / pad / truncate-to-388 behaviour."""
    x = jnp.asarray(x, jnp.float32)
    if x.ndim == 1:
        x = x[None, :]
    f = x.shape[1]
    if f < INPUT_DIM:
        x = jnp.pad(x, ((0, 0), (0, INPUT_DIM - f)))
    elif f > INPUT_DIM:
        x = x[:, :INPUT_DIM]
    return x


# ---------------------------------------------------------------------------
# Wrapper: input massaging, batch-tiled pallas_call, slice of the head slab.
# ---------------------------------------------------------------------------
def actor_critic_forward(x, params):
    x = _massage_input(x)
    b = x.shape[0]
    b_pad, tb = _choose_tile(b)
    if b_pad != b:
        x = jnp.pad(x, ((0, b_pad - b), (0, 0)))

    head = pl.pallas_call(
        actor_critic_kernel,
        out_shape=jax.ShapeDtypeStruct((b_pad, HEAD_PAD), jnp.bfloat16),
        grid=(b_pad // tb,),
        in_specs=[
            # activations: tiled along batch (f32; cast to bf16 in-kernel)
            pl.BlockSpec((tb, INPUT_DIM), lambda i: (i, 0)),
            # weights / biases: same block every step -> VMEM-resident
            pl.BlockSpec((INPUT_DIM, HIDDEN), lambda i: (0, 0)),
            pl.BlockSpec((1, HIDDEN), lambda i: (0, 0)),
            pl.BlockSpec((HIDDEN, HIDDEN), lambda i: (0, 0)),
            pl.BlockSpec((1, HIDDEN), lambda i: (0, 0)),
            pl.BlockSpec((HIDDEN, HALF), lambda i: (0, 0)),
            pl.BlockSpec((1, HALF), lambda i: (0, 0)),
            pl.BlockSpec((HALF, HEAD_PAD), lambda i: (0, 0)),
            pl.BlockSpec((1, HEAD_PAD), lambda i: (0, 0)),
        ],
        out_specs=pl.BlockSpec((tb, HEAD_PAD), lambda i: (i, 0)),
        compiler_params=pltpu.CompilerParams(
            dimension_semantics=("parallel",),
            vmem_limit_bytes=32 * 1024 * 1024),
    )(x, *params)

    probs = head[:b, 0:2].astype(jnp.float32)    # already softmax-ed in-kernel
    value = head[:b, 2:3].astype(jnp.float32)
    return probs, value


# ---------------------------------------------------------------------------
# References.
#   _reference        : mirrors the kernel's bf16-in / f32-accumulate math.
#   _reference_torch  : full-f32, unfused softmax -- fidelity to the module.
# ---------------------------------------------------------------------------
def _reference(x, params):
    w1, b1, w2, b2, w3, b3, wh, bh = params
    x = _massage_input(x)
    h = jnp.dot(x.astype(jnp.bfloat16), w1, preferred_element_type=jnp.float32) + b1
    h = jnp.maximum(h, 0.3 * h)
    h = jnp.dot(h.astype(jnp.bfloat16), w2, preferred_element_type=jnp.float32) + b2
    h = jnp.maximum(h, 0.1 * h)
    h = jnp.tanh(jnp.dot(h.astype(jnp.bfloat16), w3,
                         preferred_element_type=jnp.float32) + b3)
    head = jnp.dot(h.astype(jnp.bfloat16), wh,
                   preferred_element_type=jnp.float32) + bh
    probs = jax.nn.sigmoid(head[:, 0:2])       # lanes 0/1 hold d and -d
    value = head[:, 2:3]
    return probs, value


def _reference_torch(x, raw_params):
    w1, b1, w2, b2, w3, b3, wa, ba, wc, bc = raw_params
    x = _massage_input(x)
    h = x @ w1 + b1
    h = jnp.where(h >= 0, h, 0.3 * h)
    h = h @ w2 + b2
    h = jnp.where(h >= 0, h, 0.1 * h)
    h = jnp.tanh(h @ w3 + b3)
    probs = jax.nn.softmax(h @ wa + ba, axis=-1)
    value = h @ wc + bc
    return probs, value


def _check_case(x, kernel_params, raw_params, fwd):
    probs, value = fwd(x, kernel_params)
    jax.block_until_ready((probs, value))
    b = 1 if x.ndim == 1 else x.shape[0]
    assert probs.shape == (b, 2) and value.shape == (b, 1)

    rp, rv = _reference(x, kernel_params)            # bf16-mirrored reference
    assert jnp.allclose(probs, rp, atol=1e-2), (probs, rp)
    assert jnp.allclose(value, rv, atol=2e-2), (value, rv)

    tp, tv = _reference_torch(x, raw_params)         # f32 torch-like reference
    assert jnp.allclose(probs, tp, atol=5e-2), (probs, tp)
    assert jnp.allclose(value, tv, atol=1e-1), (value, tv)

    assert jnp.allclose(jnp.sum(probs, axis=-1), 1.0, atol=1e-2)
    assert bool(jnp.all(probs >= 0.0) & jnp.all(probs <= 1.0))


if __name__ == "__main__":
    key = jax.random.PRNGKey(0)
    kp, kx1, kx2, kx3 = jax.random.split(key, 4)
    kernel_params, raw_params = init_params(kp)

    fwd = jax.jit(functools.partial(actor_critic_forward))

    # Case 1: batch=2, exact 388-wide input (main path).
    x1 = jax.random.normal(kx1, (2, INPUT_DIM), dtype=jnp.float32)
    _check_case(x1, kernel_params, raw_params, fwd)

    # Case 2: batch=3, 380-wide input (zero-pad-to-388 path).
    x2 = jax.random.normal(kx2, (3, 380), dtype=jnp.float32)
    _check_case(x2, kernel_params, raw_params, fwd)

    # Case 3: 1-D, 400-wide input (unsqueeze + truncate-to-388 path).
    x3 = jax.random.normal(kx3, (400,), dtype=jnp.float32)
    _check_case(x3, kernel_params, raw_params, fwd)

    print("KERNEL_OK")
</pallas_src>

<mosaic_0001>
module attributes {stable_mosaic.version = 11 : i64} {
  func.func @actor_critic_kernel(%arg0: i32, %arg1: memref<16x388xf32, #tpu.memory_space<vmem>>, %arg2: memref<388x256xbf16, #tpu.memory_space<vmem>>, %arg3: memref<1x256xf32, #tpu.memory_space<vmem>>, %arg4: memref<256x256xbf16, #tpu.memory_space<vmem>>, %arg5: memref<1x256xf32, #tpu.memory_space<vmem>>, %arg6: memref<256x128xbf16, #tpu.memory_space<vmem>>, %arg7: memref<1x128xf32, #tpu.memory_space<vmem>>, %arg8: memref<128x128xbf16, #tpu.memory_space<vmem>>, %arg9: memref<1x128xf32, #tpu.memory_space<vmem>>, %arg10: memref<16x128xbf16, #tpu.memory_space<vmem>>) attributes {dimension_semantics = [#tpu.dimension_semantics<parallel>], iteration_bounds = array<i64: 1>, scalar_prefetch = 0 : i64, scratch_operands = 0 : i64, tpu.core_type = #tpu.core_type<tc>, window_params = [{transform_indices = @transform_0, window_bounds = array<i64: 16, 388>}, {pipeline_mode = #tpu.pipeline_mode<synchronous>, transform_indices = @transform_1, window_bounds = array<i64: 388, 256>}, {pipeline_mode = #tpu.pipeline_mode<synchronous>, transform_indices = @transform_2, window_bounds = array<i64: 1, 256>}, {pipeline_mode = #tpu.pipeline_mode<synchronous>, transform_indices = @transform_3, window_bounds = array<i64: 256, 256>}, {pipeline_mode = #tpu.pipeline_mode<synchronous>, transform_indices = @transform_4, window_bounds = array<i64: 1, 256>}, {pipeline_mode = #tpu.pipeline_mode<synchronous>, transform_indices = @transform_5, window_bounds = array<i64: 256, 128>}, {pipeline_mode = #tpu.pipeline_mode<synchronous>, transform_indices = @transform_6, window_bounds = array<i64: 1, 128>}, {pipeline_mode = #tpu.pipeline_mode<synchronous>, transform_indices = @transform_7, window_bounds = array<i64: 128, 128>}, {pipeline_mode = #tpu.pipeline_mode<synchronous>, transform_indices = @transform_8, window_bounds = array<i64: 1, 128>}, {transform_indices = @transform_9, window_bounds = array<i64: 16, 128>}]} {
    %c0 = arith.constant 0 : index
    %c0_0 = arith.constant 0 : index
    %0 = vector.load %arg1[%c0, %c0_0] : memref<16x388xf32, #tpu.memory_space<vmem>>, vector<16x388xf32>
    %1 = arith.truncf %0 : vector<16x388xf32> to vector<16x388xbf16>
    %c0_1 = arith.constant 0 : index
    %c0_2 = arith.constant 0 : index
    %2 = vector.load %arg2[%c0_1, %c0_2] : memref<388x256xbf16, #tpu.memory_space<vmem>>, vector<388x256xbf16>
    %cst = arith.constant dense<0.000000e+00> : vector<16x256xf32>
    %3 = tpu.matmul %1, %2, %cst {dimension_numbers = #tpu.dot_dimension_numbers<[1], [0], [0], [1], [0, 0, 1, 1], [], []>} : vector<16x388xbf16>, vector<388x256xbf16>, vector<16x256xf32> -> vector<16x256xf32>
    %c0_3 = arith.constant 0 : index
    %c0_4 = arith.constant 0 : index
    %4 = vector.load %arg3[%c0_3, %c0_4] : memref<1x256xf32, #tpu.memory_space<vmem>>, vector<1x256xf32>
    %5 = vector.broadcast %4 : vector<1x256xf32> to vector<16x256xf32>
    %6 = arith.addf %3, %5 : vector<16x256xf32>
    %cst_5 = arith.constant 3.000000e-01 : f32
    %7 = vector.broadcast %cst_5 : f32 to vector<16x256xf32>
    %8 = arith.mulf %7, %6 : vector<16x256xf32>
    %9 = arith.maximumf %6, %8 : vector<16x256xf32>
    %10 = arith.truncf %9 : vector<16x256xf32> to vector<16x256xbf16>
    %c0_6 = arith.constant 0 : index
    %c0_7 = arith.constant 0 : index
    %11 = vector.load %arg4[%c0_6, %c0_7] : memref<256x256xbf16, #tpu.memory_space<vmem>>, vector<256x256xbf16>
    %cst_8 = arith.constant dense<0.000000e+00> : vector<16x256xf32>
    %12 = tpu.matmul %10, %11, %cst_8 {dimension_numbers = #tpu.dot_dimension_numbers<[1], [0], [0], [1], [0, 0, 1, 1], [], []>} : vector<16x256xbf16>, vector<256x256xbf16>, vector<16x256xf32> -> vector<16x256xf32>
    %c0_9 = arith.constant 0 : index
    %c0_10 = arith.constant 0 : index
    %13 = vector.load %arg5[%c0_9, %c0_10] : memref<1x256xf32, #tpu.memory_space<vmem>>, vector<1x256xf32>
    %14 = vector.broadcast %13 : vector<1x256xf32> to vector<16x256xf32>
    %15 = arith.addf %12, %14 : vector<16x256xf32>
    %cst_11 = arith.constant 1.000000e-01 : f32
    %16 = vector.broadcast %cst_11 : f32 to vector<16x256xf32>
    %17 = arith.mulf %16, %15 : vector<16x256xf32>
    %18 = arith.maximumf %15, %17 : vector<16x256xf32>
    %19 = arith.truncf %18 : vector<16x256xf32> to vector<16x256xbf16>
    %c0_12 = arith.constant 0 : index
    %c0_13 = arith.constant 0 : index
    %20 = vector.load %arg6[%c0_12, %c0_13] : memref<256x128xbf16, #tpu.memory_space<vmem>>, vector<256x128xbf16>
    %cst_14 = arith.constant dense<0.000000e+00> : vector<16x128xf32>
    %21 = tpu.matmul %19, %20, %cst_14 {dimension_numbers = #tpu.dot_dimension_numbers<[1], [0], [0], [1], [0, 0, 1, 1], [], []>} : vector<16x256xbf16>, vector<256x128xbf16>, vector<16x128xf32> -> vector<16x128xf32>
    %c0_15 = arith.constant 0 : index
    %c0_16 = arith.constant 0 : index
    %22 = vector.load %arg7[%c0_15, %c0_16] : memref<1x128xf32, #tpu.memory_space<vmem>>, vector<1x128xf32>
    %23 = vector.broadcast %22 : vector<1x128xf32> to vector<16x128xf32>
    %24 = arith.addf %21, %23 : vector<16x128xf32>
    %25 = math.tanh %24 : vector<16x128xf32>
    %26 = arith.truncf %25 : vector<16x128xf32> to vector<16x128xbf16>
    %c0_17 = arith.constant 0 : index
    %c0_18 = arith.constant 0 : index
    %27 = vector.load %arg8[%c0_17, %c0_18] : memref<128x128xbf16, #tpu.memory_space<vmem>>, vector<128x128xbf16>
    %cst_19 = arith.constant dense<0.000000e+00> : vector<16x128xf32>
    %28 = tpu.matmul %26, %27, %cst_19 {dimension_numbers = #tpu.dot_dimension_numbers<[1], [0], [0], [1], [0, 0, 1, 1], [], []>} : vector<16x128xbf16>, vector<128x128xbf16>, vector<16x128xf32> -> vector<16x128xf32>
    %c0_20 = arith.constant 0 : index
    %c0_21 = arith.constant 0 : index
    %29 = vector.load %arg9[%c0_20, %c0_21] : memref<1x128xf32, #tpu.memory_space<vmem>>, vector<1x128xf32>
    %30 = vector.broadcast %29 : vector<1x128xf32> to vector<16x128xf32>
    %31 = arith.addf %28, %30 : vector<16x128xf32>
    %cst_22 = arith.constant 0.000000e+00 : f32
    %32 = vector.broadcast %cst_22 : f32 to vector<16x128xf32>
    %33 = arith.subf %32, %31 : vector<16x128xf32>
    %34 = math.exp %33 : vector<16x128xf32>
    %cst_23 = arith.constant 1.000000e+00 : f32
    %35 = vector.broadcast %cst_23 : f32 to vector<16x128xf32>
    %36 = arith.addf %35, %34 : vector<16x128xf32>
    %37 = tpu.reciprocal %36 {approx = true} : vector<16x128xf32> -> vector<16x128xf32>
    %38 = tpu.iota {dimensions = array<i32: 1>} : vector<16x128xi32>
    %c2_i32 = arith.constant 2 : i32
    %39 = vector.broadcast %c2_i32 : i32 to vector<16x128xi32>
    %40 = arith.cmpi slt, %38, %39 : vector<16x128xi32>
    %41 = arith.select %40, %37, %31 : vector<16x128xi1>, vector<16x128xf32>
    %42 = arith.truncf %41 : vector<16x128xf32> to vector<16x128xbf16>
    %c0_24 = arith.constant 0 : index
    %c0_25 = arith.constant 0 : index
    %43 = vector.load %arg10[%c0_24, %c0_25] : memref<16x128xbf16, #tpu.memory_space<vmem>>, vector<16x128xbf16>
    tpu.vector_store %arg10[%c0_24, %c0_25], %42 {strides = array<i32>} : memref<16x128xbf16, #tpu.memory_space<vmem>>, vector<16x128xbf16>,
    return
  }
  func.func @transform_0(%arg0: i32) -> (i32, i32) {
    %c0_i32 = arith.constant 0 : i32
    %c0_i32_0 = arith.constant 0 : i32
    return %arg0, %c0_i32 : i32, i32
  }
  func.func @transform_1(%arg0: i32) -> (i32, i32) {
    %c0_i32 = arith.constant 0 : i32
    %c0_i32_0 = arith.constant 0 : i32
    %c0_i32_1 = arith.constant 0 : i32
    return %c0_i32, %c0_i32_0 : i32, i32
  }
  func.func @transform_2(%arg0: i32) -> (i32, i32) {
    %c0_i32 = arith.constant 0 : i32
    %c0_i32_0 = arith.constant 0 : i32
    %c0_i32_1 = arith.constant 0 : i32
    return %c0_i32, %c0_i32_0 : i32, i32
  }
  func.func @transform_3(%arg0: i32) -> (i32, i32) {
    %c0_i32 = arith.constant 0 : i32
    %c0_i32_0 = arith.constant 0 : i32
    %c0_i32_1 = arith.constant 0 : i32
    return %c0_i32, %c0_i32_0 : i32, i32
  }
  func.func @transform_4(%arg0: i32) -> (i32, i32) {
    %c0_i32 = arith.constant 0 : i32
    %c0_i32_0 = arith.constant 0 : i32
    %c0_i32_1 = arith.constant 0 : i32
    return %c0_i32, %c0_i32_0 : i32, i32
  }
  func.func @transform_5(%arg0: i32) -> (i32, i32) {
    %c0_i32 = arith.constant 0 : i32
    %c0_i32_0 = arith.constant 0 : i32
    %c0_i32_1 = arith.constant 0 : i32
    return %c0_i32, %c0_i32_0 : i32, i32
  }
  func.func @transform_6(%arg0: i32) -> (i32, i32) {
    %c0_i32 = arith.constant 0 : i32
    %c0_i32_0 = arith.constant 0 : i32
    %c0_i32_1 = arith.constant 0 : i32
    return %c0_i32, %c0_i32_0 : i32, i32
  }
  func.func @transform_7(%arg0: i32) -> (i32, i32) {
    %c0_i32 = arith.constant 0 : i32
    %c0_i32_0 = arith.constant 0 : i32
    %c0_i32_1 = arith.constant 0 : i32
    return %c0_i32, %c0_i32_0 : i32, i32
  }
  func.func @transform_8(%arg0: i32) -> (i32, i32) {
    %c0_i32 = arith.constant 0 : i32
    %c0_i32_0 = arith.constant 0 : i32
    %c0_i32_1 = arith.constant 0 : i32
    return %c0_i32, %c0_i32_0 : i32, i32
  }
  func.func @transform_9(%arg0: i32) -> (i32, i32) {
    %c0_i32 = arith.constant 0 : i32
    %c0_i32_0 = arith.constant 0 : i32
    return %arg0, %c0_i32 : i32, i32
  }
}

</mosaic_0001>

<bundles_post_ra>
// kernel: actor_critic_forward.1
= control target key start
LH: loop header
LB: loop body
LE: loop exit
PB: predicated region body
PF: predicated region fallthrough
CT: control target
= control target key end

     0   :  { %14 = vsyncpa [#allocation3], 0  ;;  %s1661_s0 = inlined_call_operand.vmem [shape: f32[16,388], index: 0, kind: input, shape index: {}]   ;;  %s1662_s1 = inlined_call_operand.hbm [shape: bf16[388,256], index: 1, kind: input, shape index: {}]   ;;  %s1663_s2 = inlined_call_operand.vmem [shape: f32[1,256], index: 2, kind: input, shape index: {}]   ;;  %s1664_s3 = inlined_call_operand.hbm [shape: bf16[256,256], index: 3, kind: input, shape index: {}]   ;;  %s1665_s4 = inlined_call_operand.vmem [shape: f32[1,256], index: 4, kind: input, shape index: {}]   ;;  %s1666_s5 = inlined_call_operand.hbm [shape: bf16[256,128], index: 5, kind: input, shape index: {}]   ;;  %s1667_s6 = inlined_call_operand.vmem [shape: f32[1,128], index: 6, kind: input, shape index: {}]   ;;  %s1668_s7 = inlined_call_operand.vmem [shape: bf16[128,128], index: 7, kind: input, shape index: {}]   ;;  %s1669_s8 = inlined_call_operand.vmem [shape: f32[1,128], index: 8, kind: input, shape index: {}]   ;;  %s1670_s9 = inlined_call_operand.vmem [shape: bf16[16,128], index: 9, kind: output, shape index: {}]  }
   0x1   :  { %15 = vsyncpa [#allocation5], 0  ;;  %s1493_s30 = smov [#allocation4]   ;;  %s1494_s11 = smov [#allocation2]  }
   0x2   :  { %s37_s10 = sshll.u32 %s1493_s30, 4  ;;  %s23_s12 = sshll.u32 %s1494_s11, 4  ;;  %s38_s10 = int_to_ptr.vmem [resolvable:$true] %s37_s10  ;;  %s1552_s12 = int_to_ptr.vmem [resolvable:$true] %s23_s12 }
   0x3   :  { %s1423_s15 = scalar_lea.hbm %s1664_s3, 4096 }
   0x4   :  { %p1424_p0 = scmp.ne.s32.totalorder %s1664_s3, %s1423_s15  ;;  %p1427_p1 = scmp.lt.u32.totalorder %s1423_s15, %s1664_s3 }
   0x6   :  { %p1429_p2 = pnand %p1427_p1, %p1424_p0 }
   0x8   :  { %1432 = shalt.err (!%p1429_p2)
}
   0x9   :  { %s1433_s20 = scalar_lea.vmem %s38_s10, 4096  ;;  %p1438_p4 = scmp.lt.s32.totalorder %s38_s10, %s38_s10 }
   0xa   :  { %p1434_p3 = scmp.ne.s32.totalorder %s38_s10, %s1433_s20  ;;  %p1439_p5 = scmp.lt.s32.totalorder %s1433_s20, %s1433_s20 }
   0xc   :  { %p1440_p6 = por %p1439_p5, %p1438_p4 }
   0xe   :  { %p1441_p7 = pnand %p1440_p6, %p1434_p3 }
  0x10   :  { %1444 = shalt.err (!%p1441_p7)
}
  0x11   :  { %s1495_s21 = smov 128   ;;  %s1496_s22 = smov 8  }
  0x12   :  { %43 = dma.hbm_to_vmem [thread:$0]  %s1664_s3, 4096, %s38_s10, [#allocation5], %s1495_s21, %s1495_s21, %s1496_s22  }
  0x13   :  { %s1445_s27 = scalar_lea.hbm %s1662_s1, 6272 }
  0x14   :  { %p1446_p8 = scmp.ne.s32.totalorder %s1662_s1, %s1445_s27  ;;  %p1449_p9 = scmp.lt.u32.totalorder %s1445_s27, %s1662_s1 }
  0x16   :  { %p1451_p10 = pnand %p1449_p9, %p1446_p8 }
  0x18   :  { %1454 = shalt.err (!%p1451_p10)
}
  0x19   :  { %s1455_s13 = scalar_lea.vmem %s1552_s12, 6272  ;;  %p1460_p12 = scmp.lt.s32.totalorder %s1552_s12, %s1552_s12 }
  0x1a   :  { %p1456_p11 = scmp.ne.s32.totalorder %s1552_s12, %s1455_s13  ;;  %p1461_p13 = scmp.lt.s32.totalorder %s1455_s13, %s1455_s13 }
  0x1c   :  { %p1462_p0 = por %p1461_p13, %p1460_p12 }
  0x1e   :  { %p1463_p1 = pnand %p1462_p0, %p1456_p11 }
  0x20   :  { %1466 = shalt.err (!%p1463_p1)
}
  0x21   :  { %29 = dma.hbm_to_vmem [thread:$0]  %s1662_s1, 6272, %s1552_s12, [#allocation3], %s1495_s21, %s1495_s21, %s1496_s22  }
  0x22   :  { %s1497_s14 = smov [#allocation6]   ;;  %s1467_s18 = scalar_lea.hbm %s1666_s5, 2048 }
  0x23   :  { %s51_s15 = sshll.u32 %s1497_s14, 4  ;;  %p1468_p2 = scmp.ne.s32.totalorder %s1666_s5, %s1467_s18  ;;  %s52_s15 = int_to_ptr.vmem [resolvable:$true] %s51_s15 }
  0x24   :  { %p1471_p3 = scmp.lt.u32.totalorder %s1467_s18, %s1666_s5 }
  0x26   :  { %p1473_p4 = pnand %p1471_p3, %p1468_p2 }
  0x28   :  { %1476 = shalt.err (!%p1473_p4)
}
  0x29   :  { %s1477_s25 = scalar_lea.vmem %s52_s15, 2048  ;;  %p1482_p6 = scmp.lt.s32.totalorder %s52_s15, %s52_s15 }
  0x2a   :  { %p1478_p5 = scmp.ne.s32.totalorder %s52_s15, %s1477_s25  ;;  %p1483_p7 = scmp.lt.s32.totalorder %s1477_s25, %s1477_s25 }
  0x2c   :  { %p1484_p8 = por %p1483_p7, %p1482_p6 }
  0x2e   :  { %p1485_p9 = pnand %p1484_p8, %p1478_p5 }
  0x30   :  { %1488 = shalt.err (!%p1485_p9)
}
  0x31   :  { %s1498_s1 = smov 64   ;;  %s1499_s12 = smov 4  }
  0x32   :  { %57 = dma.hbm_to_vmem [thread:$0]  %s1666_s5, 2048, %s52_s15, [#allocation5], %s1498_s1, %s1498_s1, %s1499_s12  }
  0x33   :  { %1489 = dma.done.wait [#allocation3], 6272  }
  0x34   :  { %1490 = vsyncadd [#allocation3], 4294961024 }
  0x35   :  { %1491 = dma.done.wait [#allocation5], 6144  }
  0x36   :  { %1492 = vsyncadd [#allocation5], 4294961152  ;;  %v1265_v0 = vld [vmem:[#allocation2 + $0x4] ss:$8 sps:$4 sm:$0xff]   ;;  %v1267_v1 = vld [vmem:[#allocation2] ss:$8 sps:$4 sm:$0xff]  }
  0x37   :  { %403 = vmatprep.subr.bf16.mxu0 %v1265_v0  ;;  %v1268_v2 = vld [vmem:[#allocation2 + $0x14] ss:$8 sps:$4 sm:$0xff]   ;;  %v1270_v3 = vld [vmem:[#allocation2 + $0x10] ss:$8 sps:$4 sm:$0xff]   ;;  %v1271_v4 = vld [vmem:[#allocation2 + $0x24] ss:$8 sps:$4 sm:$0xff]  }
  0x38   :  { %404 = vmatpush1.bf16.msra.mxu0 %v1267_v1  ;;  %v1273_v5 = vld [vmem:[#allocation2 + $0x20] ss:$8 sps:$4 sm:$0xff]   ;;  %v1274_v6 = vld [vmem:[#allocation2 + $0x34] ss:$8 sps:$4 sm:$0xff]   ;;  %v1276_v7 = vld [vmem:[#allocation2 + $0x30] ss:$8 sps:$4 sm:$0xff]  }
  0x39   :  { %405 = vmatprep.subr.bf16.mxu0 %v1268_v2  ;;  %v1277_v8 = vld [vmem:[#allocation2 + $0x44] ss:$8 sps:$4 sm:$0xff]   ;;  %v1279_v9 = vld [vmem:[#allocation2 + $0x40] ss:$8 sps:$4 sm:$0xff]   ;;  %v1280_v10 = vld [vmem:[#allocation2 + $0x54] ss:$8 sps:$4 sm:$0xff]  }
  0x3a   :  { %v1282_v11 = vld [vmem:[#allocation2 + $0x50] ss:$8 sps:$4 sm:$0xff]   ;;  %v1283_v12 = vld [vmem:[#allocation2 + $0x64] ss:$8 sps:$4 sm:$0xff]   ;;  %v1285_v16 = vld [vmem:[#allocation2 + $0x60] ss:$8 sps:$4 sm:$0xff]  }
  0x3b   :  { %v75_v13 = vld [vmem:[%s1661_s0 + $0x8] sm:$0xff]  ;;  %v1286_v17 = vld [vmem:[#allocation2 + $0x74] ss:$8 sps:$4 sm:$0xff]   ;;  %v1288_v18 = vld [vmem:[#allocation2 + $0x70] ss:$8 sps:$4 sm:$0xff]   ;;  %vm392_vm0 = vcmask 31744  }
  0x3c   :  { %406 = vmatpush1.bf16.msra.mxu0 %v1270_v3  ;;  %v79_v14 = vld [vmem:[%s1661_s0 + $0x28] sm:$0xff]  ;;  %v1292_v21 = vld [vmem:[#allocation2 + $0x94] ss:$8 sps:$4 sm:$0xff]   ;;  %v1294_v22 = vld [vmem:[#allocation2 + $0x90] ss:$8 sps:$4 sm:$0xff]   ;;  %vm396_vm1 = vcmask 1041408  }
  0x3d   :  { %407 = vmatprep.subr.bf16.mxu0 %v1271_v4  ;;  %v83_v15 = vpack.c.bf16 %v79_v14, %v75_v13  ;;  %v1289_v19 = vld [vmem:[#allocation2 + $0x84] ss:$8 sps:$4 sm:$0xff]   ;;  %v1291_v20 = vld [vmem:[#allocation2 + $0x80] ss:$8 sps:$4 sm:$0xff]   ;;  %v1298_v30 = vld [vmem:[#allocation2 + $0xb4] ss:$8 sps:$4 sm:$0xff]  }
  0x3e   :  { %v1295_v23 = vld [vmem:[#allocation2 + $0xa4] ss:$8 sps:$4 sm:$0xff]   ;;  %v1341_v25 = vld [vmem:[#allocation4] ss:$8 sps:$4 sm:$0xff]   ;;  %v1344_v28 = vld [vmem:[#allocation4 + $0x10] ss:$8 sps:$4 sm:$0xff]  }
  0x3f   :  { %435 = vmatprep.mubr.bf16.mxu0 %v83_v15  ;;  %v1339_v24 = vld [vmem:[#allocation4 + $0x4] ss:$8 sps:$4 sm:$0xff]   ;;  %v1342_v26 = vld [vmem:[#allocation4 + $0x14] ss:$8 sps:$4 sm:$0xff]   ;;  %v1297_v27 = vld [vmem:[#allocation2 + $0xa0] ss:$8 sps:$4 sm:$0xff]  }
  0x40   :  { %408 = vmatpush1.bf16.msra.mxu0 %v1273_v5  ;;  %703 = vmatprep.subr.bf16.mxu1 %v1339_v24  ;;  %v1345_v29 = vld [vmem:[#allocation4 + $0x24] ss:$8 sps:$4 sm:$0xff]   ;;  %v1300_v31 = vld [vmem:[#allocation2 + $0xb0] ss:$8 sps:$4 sm:$0xff]   ;;  %v1348_v33 = vld [vmem:[#allocation4 + $0x34] ss:$8 sps:$4 sm:$0xff]  }
  0x41   :  { %409 = vmatprep.subr.bf16.mxu0 %v1274_v6  ;;  %704 = vmatpush1.bf16.msra.mxu1 %v1341_v25  ;;  %v1347_v32 = vld [vmem:[#allocation4 + $0x20] ss:$8 sps:$4 sm:$0xff]   ;;  %v1301_v34 = vld [vmem:[#allocation2 + $0xc4] ss:$8 sps:$4 sm:$0xff]   ;;  %v1350_v36 = vld [vmem:[#allocation4 + $0x30] ss:$8 sps:$4 sm:$0xff]  }
  0x42   :  { %705 = vmatprep.subr.bf16.mxu1 %v1342_v26  ;;  %v1303_v35 = vld [vmem:[#allocation2 + $0xc0] ss:$8 sps:$4 sm:$0xff]   ;;  %v1351_v37 = vld [vmem:[#allocation4 + $0x44] ss:$8 sps:$4 sm:$0xff]   ;;  %v1306_v39 = vld [vmem:[#allocation2 + $0xd0] ss:$8 sps:$4 sm:$0xff]  }
  0x43   :  { %v1304_v38 = vld [vmem:[#allocation2 + $0xd4] ss:$8 sps:$4 sm:$0xff]   ;;  %v1353_v40 = vld [vmem:[#allocation4 + $0x40] ss:$8 sps:$4 sm:$0xff]   ;;  %v1307_v42 = vld [vmem:[#allocation2 + $0xe4] ss:$8 sps:$4 sm:$0xff]  }
  0x44   :  { %410 = vmatpush1.bf16.msra.mxu0 %v1276_v7  ;;  %v1354_v41 = vld [vmem:[#allocation4 + $0x54] ss:$8 sps:$4 sm:$0xff]   ;;  %v1356_v43 = vld [vmem:[#allocation4 + $0x50] ss:$8 sps:$4 sm:$0xff]   ;;  %v1357_v45 = vld [vmem:[#allocation4 + $0x64] ss:$8 sps:$4 sm:$0xff]  }
  0x45   :  { %411 = vmatprep.subr.bf16.mxu0 %v1277_v8  ;;  %706 = vmatpush1.bf16.msra.mxu1 %v1344_v28  ;;  %v1309_v44 = vld [vmem:[#allocation2 + $0xe0] ss:$8 sps:$4 sm:$0xff]   ;;  %v1310_v46 = vld [vmem:[#allocation2 + $0xf4] ss:$8 sps:$4 sm:$0xff]   ;;  %v1312_v48 = vld [vmem:[#allocation2 + $0xf0] ss:$8 sps:$4 sm:$0xff]  }
  0x46   :  { %707 = vmatprep.subr.bf16.mxu1 %v1345_v29  ;;  %v1359_v47 = vld [vmem:[#allocation4 + $0x60] ss:$8 sps:$4 sm:$0xff]   ;;  %v74_v49 = vld [vmem:[%s1661_s0] sm:$0xff]  ;;  %v77_v53 = vld [vmem:[%s1661_s0 + $0x18] sm:$0xff]  ;;  %vm1501_vm2 = vmmov 0  }
  0x47   :  { %v78_v50 = vld [vmem:[%s1661_s0 + $0x20] sm:$0xff]  ;;  %v81_v54 = vld [vmem:[%s1661_s0 + $0x38] sm:$0xff]  ;;  %v1363_v59 = vld [vmem:[#allocation4 + $0x84] ss:$8 sps:$4 sm:$0xff]  }
  0x48   :  { %412 = vmatpush1.bf16.msra.mxu0 %v1279_v9  ;;  %v1360_v51 = vld [vmem:[#allocation4 + $0x74] ss:$8 sps:$4 sm:$0xff]   ;;  %v1362_v55 = vld [vmem:[#allocation4 + $0x70] ss:$8 sps:$4 sm:$0xff]   ;;  %v82_v57 = vpack.c.bf16 %v78_v50, %v74_v49  ;;  %v85_v60 = vpack.c.bf16 %v81_v54, %v77_v53  ;;  %v1365_v61 = vld [vmem:[#allocation4 + $0x80] ss:$8 sps:$4 sm:$0xff]  }
  0x49   :  { %413 = vmatprep.subr.bf16.mxu0 %v1280_v10  ;;  %708 = vmatpush1.bf16.msra.mxu1 %v1347_v32  ;;  %v1315_v52 = vld [vmem:[#allocation2 + $0x104] ss:$8 sps:$4 sm:$0xff]   ;;  %v1313_v56 = vld [vmem:[#allocation2 + $0x100] ss:$8 sps:$4 sm:$0xff]   ;;  %v1318_v58 = vld [vmem:[#allocation2 + $0x114] ss:$8 sps:$4 sm:$0xff]  }
  0x4a   :  { %709 = vmatprep.subr.bf16.mxu1 %v1348_v33  ;;  %v1316_v62 = vld [vmem:[#allocation2 + $0x110] ss:$8 sps:$4 sm:$0xff]   ;;  %v1366_v63 = vld [vmem:[#allocation4 + $0x94] ss:$8 sps:$4 sm:$0xff]   ;;  %v1319_v2 = vld [vmem:[#allocation2 + $0x120] ss:$8 sps:$4 sm:$0xff]   ;;  %v137_v33 = vlaneseq }
  0x4b   :  { %v1321_v0 = vld [vmem:[#allocation2 + $0x124] ss:$8 sps:$4 sm:$0xff]   ;;  %v1368_v1 = vld [vmem:[#allocation4 + $0x90] ss:$8 sps:$4 sm:$0xff]   ;;  %v1324_v4 = vld [vmem:[#allocation2 + $0x134] ss:$8 sps:$4 sm:$0xff]  }
  0x4c   :  { %414 = vmatpush1.bf16.msra.mxu0 %v1282_v11  ;;  %v1369_v3 = vld [vmem:[#allocation4 + $0xa4] ss:$8 sps:$4 sm:$0xff]   ;;  %v1371_v5 = vld [vmem:[#allocation4 + $0xa0] ss:$8 sps:$4 sm:$0xff]   ;;  %v1372_v7 = vld [vmem:[#allocation4 + $0xb4] ss:$8 sps:$4 sm:$0xff]  }
  0x4d   :  { %415 = vmatprep.subr.bf16.mxu0 %v1283_v12  ;;  %710 = vmatpush1.bf16.msra.mxu1 %v1350_v36  ;;  %v1322_v6 = vld [vmem:[#allocation2 + $0x130] ss:$8 sps:$4 sm:$0xff]   ;;  %v1327_v8 = vld [vmem:[#allocation2 + $0x144] ss:$8 sps:$4 sm:$0xff]   ;;  %v1325_v10 = vld [vmem:[#allocation2 + $0x140] ss:$8 sps:$4 sm:$0xff]  }
  0x4e   :  { %711 = vmatprep.subr.bf16.mxu1 %v1351_v37  ;;  %v1374_v9 = vld [vmem:[#allocation4 + $0xb0] ss:$8 sps:$4 sm:$0xff]   ;;  %v1375_v11 = vld [vmem:[#allocation4 + $0xc4] ss:$8 sps:$4 sm:$0xff]   ;;  %v1377_v13 = vld [vmem:[#allocation4 + $0xc0] ss:$8 sps:$4 sm:$0xff]  }
  0x4f   :  { %v1330_v12 = vld [vmem:[#allocation2 + $0x154] ss:$8 sps:$4 sm:$0xff]   ;;  %v1328_v14 = vld [vmem:[#allocation2 + $0x150] ss:$8 sps:$4 sm:$0xff]   ;;  %v1333_v15 = vld [vmem:[#allocation2 + $0x164] ss:$8 sps:$4 sm:$0xff]  }
  0x50   :  { %416 = vmatpush1.bf16.msra.mxu0 %v1285_v16  ;;  %v1331_v16 = vld [vmem:[#allocation2 + $0x160] ss:$8 sps:$4 sm:$0xff]   ;;  %v1378_v26 = vld [vmem:[#allocation4 + $0xd4] ss:$8 sps:$4 sm:$0xff]   ;;  %v1381_v28 = vld [vmem:[#allocation4 + $0xe4] ss:$8 sps:$4 sm:$0xff]  }
  0x51   :  { %417 = vmatprep.subr.bf16.mxu0 %v1286_v17  ;;  %712 = vmatpush1.bf16.msra.mxu1 %v1353_v40  ;;  %v1336_v17 = vld [vmem:[#allocation2 + $0x174] ss:$8 sps:$4 sm:$0xff]   ;;  %v1383_v29 = vld [vmem:[#allocation4 + $0xe0] ss:$8 sps:$4 sm:$0xff]   ;;  %v135_v36 = vld [vmem:[%s1663_s2] sm:$0x3] }
  0x52   :  { %713 = vmatprep.subr.bf16.mxu1 %v1354_v41  ;;  %v1387_v32 = vld [vmem:[#allocation6 + $0x40] sm:$0xff]  }
  0x54   :  { %418 = vmatpush1.bf16.msra.mxu0 %v1288_v18  ;;  %v134_v18 = vld [vmem:[#allocation2 + $0x180] sm:$0x33] }
  0x55   :  { %419 = vmatprep.subr.bf16.mxu0 %v1289_v19  ;;  %714 = vmatpush1.bf16.msra.mxu1 %v1356_v43  ;;  %v1334_v19 = vld [vmem:[#allocation2 + $0x170] ss:$8 sps:$4 sm:$0xff]  }
  0x56   :  { %715 = vmatprep.subr.bf16.mxu1 %v1357_v45 }
  0x58   :  { %420 = vmatpush1.bf16.msra.mxu0 %v1291_v20  ;;  %v1127_v20 = vcombine.high %v134_v18, %v134_v18 }
  0x59   :  { %421 = vmatprep.subr.bf16.mxu0 %v1292_v21  ;;  %716 = vmatpush1.bf16.msra.mxu1 %v1359_v47  ;;  %v1126_v21 = vcombine.low %v134_v18, %v134_v18 }
  0x5a   :  { %717 = vmatprep.subr.bf16.mxu1 %v1360_v51 }
  0x5b   :  { %v398_v24 = vsel %vm396_vm1, %v1126_v21, 0 }
  0x5c   :  { %422 = vmatpush1.bf16.msra.mxu0 %v1294_v22  ;;  %v76_v22 = vld [vmem:[%s1661_s0 + $0x10] sm:$0xff] }
  0x5d   :  { %423 = vmatprep.subr.bf16.mxu0 %v1295_v23  ;;  %718 = vmatpush1.bf16.msra.mxu1 %v1362_v55  ;;  %v80_v23 = vld [vmem:[%s1661_s0 + $0x30] sm:$0xff] }
  0x5e   :  { %719 = vmatprep.subr.bf16.mxu1 %v1363_v59  ;;  %v84_v25 = vpack.c.bf16 %v80_v23, %v76_v22  ;;  %v1389_v59 = vld [vmem:[#allocation6 + $0x48] sm:$0xff]  }
  0x60   :  { %424 = vmatpush1.bf16.msra.mxu0 %v1297_v27  ;;  %v1380_v27 = vld [vmem:[#allocation4 + $0xd0] ss:$8 sps:$4 sm:$0xff]  }
  0x61   :  { %425 = vmatprep.subr.bf16.mxu0 %v1298_v30  ;;  %720 = vmatpush1.bf16.msra.mxu1 %v1365_v61  ;;  %v1384_v30 = vld [vmem:[#allocation4 + $0xf4] ss:$8 sps:$4 sm:$0xff]  }
  0x62   :  { %721 = vmatprep.subr.bf16.mxu1 %v1366_v63  ;;  %v1391_v61 = vld [vmem:[#allocation6 + $0x50] sm:$0xff]   ;;  %v1393_v63 = vld [vmem:[#allocation6 + $0x58] sm:$0xff]  }
  0x64   :  { %426 = vmatpush1.bf16.msra.mxu0 %v1300_v31  ;;  %v1386_v31 = vld [vmem:[#allocation4 + $0xf0] ss:$8 sps:$4 sm:$0xff]  }
  0x65   :  { %427 = vmatprep.subr.bf16.mxu0 %v1301_v34  ;;  %722 = vmatpush1.bf16.msra.mxu1 %v1368_v1  ;;  %v138_v34 = vshrl.u32 %v137_v33, 7  ;;  %v1395_v1 = vld [vmem:[#allocation6 + $0x60] sm:$0xff]  }
  0x66   :  { %723 = vmatprep.subr.bf16.mxu1 %v1369_v3  ;;  %v1397_v3 = vld [vmem:[#allocation6 + $0x68] sm:$0xff]  }
  0x67   :  { %v143_v37 = vsub.s32 1, %v138_v34 }
  0x68   :  { %428 = vmatpush1.bf16.msra.mxu0 %v1303_v35  ;;  %v139_v35 = vsub.s32 0, %v138_v34  ;;  %v1405_v34 = vld [vmem:[%s1668_s7 + $0x10] sm:$0xff]  }
  0x69   :  { %429 = vmatprep.subr.bf16.mxu0 %v1304_v38  ;;  %724 = vmatpush1.bf16.msra.mxu1 %v1371_v5  ;;  %v1399_v5 = vld [vmem:[#allocation6 + $0x70] sm:$0xff]  }
  0x6a   :  { %725 = vmatprep.subr.bf16.mxu1 %v1372_v7  ;;  %v140_v38 = vrot.slane %v135_v36, %v139_v35  ;;  %v1401_v7 = vld [vmem:[#allocation6 + $0x78] sm:$0xff]  }
  0x6c   :  { %430 = vmatpush1.bf16.msra.mxu0 %v1306_v39  ;;  %v144_v39 = vrot.slane %v135_v36, %v143_v37  ;;  %v1407_v36 = vld [vmem:[%s1668_s7 + $0x20] sm:$0xff]  }
  0x6d   :  { %431 = vmatprep.subr.bf16.mxu0 %v1307_v42  ;;  %726 = vmatpush1.bf16.msra.mxu1 %v1374_v9  ;;  %v1500_v9 = vmov 0.0  }
  0x6e   :  { %727 = vmatprep.subr.bf16.mxu1 %v1375_v11 }
  0x70   :  { %432 = vmatpush1.bf16.msra.mxu0 %v1309_v44 }
  0x71   :  { %433 = vmatprep.subr.bf16.mxu0 %v1310_v46  ;;  %728 = vmatpush1.bf16.msra.mxu1 %v1377_v13 }
  0x72   :  { %729 = vmatprep.subr.bf16.mxu1 %v1378_v26 }
  0x74   :  { %434 = vmatpush1.bf16.msra.mxu0 %v1312_v48 }
  0x75   :  { %446 = vmatprep.subr.bf16.mxu0 %v1315_v52  ;;  %730 = vmatpush1.bf16.msra.mxu1 %v1380_v27 }
  0x76   :  { %731 = vmatprep.subr.bf16.mxu1 %v1381_v28 }
  0x77   :  { %436 = vmatmul.mubr.bf16.vlgmr.msra.gmra.mrb[0].mxu0 %v82_v57 }
  0x78   :  { %447 = vmatpush1.bf16.msra.mxu0 %v1313_v56  ;;  %1129 = vmatprep.mubr.msk.bf16.mxu0 %vm392_vm0, %v85_v60  ;;  %v1390_v60 = vld [vmem:[#allocation6 + $0x8] sm:$0xff]  }
  0x79   :  { %448 = vmatprep.subr.bf16.mxu0 %v1318_v58  ;;  %732 = vmatpush1.bf16.msra.mxu1 %v1383_v29  ;;  %v1388_v58 = vld [vmem:[#allocation6] sm:$0xff]  }
  0x7a   :  { %733 = vmatprep.subr.bf16.mxu1 %v1384_v30 }
  0x7c   :  { %449 = vmatpush1.bf16.msra.mxu0 %v1316_v62  ;;  %v1392_v62 = vld [vmem:[#allocation6 + $0x10] sm:$0xff]  }
  0x7d   :  { %450 = vmatprep.subr.bf16.mxu0 %v1321_v0  ;;  %734 = vmatpush1.bf16.msra.mxu1 %v1386_v31  ;;  %v1394_v0 = vld [vmem:[#allocation6 + $0x18] sm:$0xff]  }
  0x7e   :  { %1197 = vmatprep.subr.bf16.mxu1 %v1387_v32  ;;  %v1403_v31 = vld [vmem:[%s1668_s7] sm:$0xff]   ;;  %v1404_v32 = vld [vmem:[%s1668_s7 + $0x8] sm:$0xff]  }
  0x80   :  { %451 = vmatpush1.bf16.msra.mxu0 %v1319_v2  ;;  %v1396_v2 = vld [vmem:[#allocation6 + $0x20] sm:$0xff]  }
  0x81   :  { %452 = vmatprep.subr.bf16.mxu0 %v1324_v4  ;;  %v1398_v4 = vld [vmem:[#allocation6 + $0x28] sm:$0xff]  }
  0x84   :  { %453 = vmatpush1.bf16.msra.mxu0 %v1322_v6  ;;  %v1400_v6 = vld [vmem:[#allocation6 + $0x30] sm:$0xff]  }
  0x85   :  { %454 = vmatprep.subr.bf16.mxu0 %v1327_v8  ;;  %v1402_v8 = vld [vmem:[#allocation6 + $0x38] sm:$0xff]  }
  0x88   :  { %455 = vmatpush1.bf16.msra.mxu0 %v1325_v10  ;;  %v531_v10 = vld [vmem:[%s1665_s4] sm:$0x3] }
  0x89   :  { %456 = vmatprep.subr.bf16.mxu0 %v1330_v12  ;;  %v536_v11 = vrot.slane %v531_v10, %v139_v35  ;;  %v540_v12 = vrot.slane %v531_v10, %v143_v37  ;;  %v1406_v35 = vld [vmem:[%s1668_s7 + $0x18] sm:$0xff]   ;;  %v1408_v37 = vld [vmem:[%s1668_s7 + $0x28] sm:$0xff]  }
  0x8c   :  { %457 = vmatpush1.bf16.msra.mxu0 %v1328_v14 }
  0x8d   :  { %458 = vmatprep.subr.bf16.mxu0 %v1333_v15 }
  0x90   :  { %459 = vmatpush1.bf16.msra.mxu0 %v1331_v16 }
  0x91   :  { %460 = vmatprep.subr.bf16.mxu0 %v1336_v17 }
  0x94   :  { %461 = vmatpush1.bf16.msra.mxu0 %v1334_v19 }
  0x95   :  { %1128 = vmatprep.subr.msk.bf16.mxu0 %vm396_vm1, %v1127_v20 }
  0x98   :  { %463 = vmatpush1.bf16.msra.mxu0 %v398_v24 }
  0x9b   :  { %479 = vmatmul.mubr.bf16.vlgmr.msra.gmra.mrb[0].mxu0 %v84_v25 }
 0x16e   :  { %v480_v40 = vpop.f32.mrb[0].mxu0 }
 0x16f   :  { %v1248_v41 = vadd.f32 %v480_v40, %v140_v38  ;;  %v482_v42 = vpop.f32.mrb[1].mxu0 }
 0x170   :  { %v1249_v43 = vadd.f32 %v482_v42, %v144_v39  ;;  %v484_v44 = vpop.f32.mrb[2].mxu0 }
 0x171   :  { %v489_v45 = vmul.f32 0.3, %v1248_v41  ;;  %v1250_v46 = vadd.f32 %v484_v44, %v140_v38  ;;  %v486_v47 = vpop.f32.mrb[3].mxu0  ;;  %v1409_v38 = vld [vmem:[%s1668_s7 + $0x30] sm:$0xff]  }
 0x172   :  { %v490_v48 = vmul.f32 0.3, %v1249_v43  ;;  %v1251_v49 = vadd.f32 %v486_v47, %v144_v39  ;;  %v1410_v39 = vld [vmem:[%s1668_s7 + $0x38] sm:$0xff]  }
 0x173   :  { %v491_v50 = vmul.f32 0.3, %v1250_v46  ;;  %v493_v52 = vmax.f32 %v1248_v41, %v489_v45  ;;  %v1162_v41 = vld [vmem:[%s1667_s6] ss:$0 sm:$0xff] }
 0x174   :  { %v492_v51 = vmul.f32 0.3, %v1251_v49  ;;  %v494_v54 = vmax.f32 %v1249_v43, %v490_v48 }
 0x175   :  { %v495_v53 = vmax.f32 %v1250_v46, %v491_v50 }
 0x176   :  { %v496_v55 = vmax.f32 %v1251_v49, %v492_v51 }
 0x177   :  { %v497_v56 = vpack.c.bf16 %v495_v53, %v493_v52  ;;  %v1179_v52 = vld [vmem:[%s1669_s8] ss:$0 sm:$0xff] }
 0x178   :  { %v498_v57 = vpack.c.bf16 %v496_v55, %v494_v54 }
 0x17a   :  { %735 = vmatprep.mubr.bf16.mxu1 %v498_v57 }
 0x17b   :  { %736 = vmatmul.mubr.bf16.vlgmr.msra.gmra.mrb[0].mxu1 %v497_v56 }
 0x17c   :  { %1198 = vmatpush3.bf16.msra.mxu1 %v1388_v58 }
 0x17d   :  { %1199 = vmatprep.subr.bf16.mxu1 %v1389_v59 }
 0x180   :  { %1200 = vmatpush3.bf16.msra.mxu1 %v1390_v60 }
 0x181   :  { %1201 = vmatprep.subr.bf16.mxu1 %v1391_v61 }
 0x184   :  { %1202 = vmatpush3.bf16.msra.mxu1 %v1392_v62 }
 0x185   :  { %1203 = vmatprep.subr.bf16.mxu1 %v1393_v63 }
 0x188   :  { %1204 = vmatpush3.bf16.msra.mxu1 %v1394_v0 }
 0x189   :  { %1205 = vmatprep.subr.bf16.mxu1 %v1395_v1 }
 0x18c   :  { %1206 = vmatpush3.bf16.msra.mxu1 %v1396_v2 }
 0x18d   :  { %1207 = vmatprep.subr.bf16.mxu1 %v1397_v3  ;;  %v1058_v3 = vand.u32 127, %v137_v33 }
 0x18f   :  { %vm1059_vm3 = vcmp.lt.s32.totalorder %v1058_v3, 2 }
 0x190   :  { %1208 = vmatpush3.bf16.msra.mxu1 %v1398_v4 }
 0x191   :  { %1209 = vmatprep.subr.bf16.mxu1 %v1399_v5 }
 0x194   :  { %1210 = vmatpush3.bf16.msra.mxu1 %v1400_v6 }
 0x195   :  { %1211 = vmatprep.subr.bf16.mxu1 %v1401_v7 }
 0x198   :  { %1212 = vmatpush3.bf16.msra.mxu1 %v1402_v8 }
 0x199   :  { %1228 = vmatprep.subr.bf16.mxu1 %v1500_v9 }
 0x24e   :  { %v737_v13 = vpop.f32.mrb[0].mxu1 }
 0x24f   :  { %v738_v14 = vadd.f32 %v737_v13, %v536_v11  ;;  %v739_v15 = vpop.f32.mrb[1].mxu1 }
 0x250   :  { %v740_v16 = vadd.f32 %v739_v15, %v540_v12  ;;  %v741_v17 = vpop.f32.mrb[2].mxu1 }
 0x251   :  { %v746_v18 = vmul.f32 0.1, %v738_v14  ;;  %v742_v19 = vadd.f32 %v741_v17, %v536_v11  ;;  %v743_v20 = vpop.f32.mrb[3].mxu1 }
 0x252   :  { %v747_v21 = vmul.f32 0.1, %v740_v16  ;;  %v744_v22 = vadd.f32 %v743_v20, %v540_v12 }
 0x253   :  { %v748_v23 = vmul.f32 0.1, %v742_v19  ;;  %v750_v25 = vmax.f32 %v738_v14, %v746_v18 }
 0x254   :  { %v749_v24 = vmul.f32 0.1, %v744_v22  ;;  %v751_v27 = vmax.f32 %v740_v16, %v747_v21 }
 0x255   :  { %v752_v26 = vmax.f32 %v742_v19, %v748_v23 }
 0x256   :  { %v753_v28 = vmax.f32 %v744_v22, %v749_v24 }
 0x257   :  { %v754_v29 = vpack.c.bf16 %v752_v26, %v750_v25 }
 0x258   :  { %v755_v30 = vpack.c.bf16 %v753_v28, %v751_v27 }
 0x25a   :  { %923 = vmatprep.mubr.bf16.mxu1 %v755_v30 }
 0x25b   :  { %924 = vmatmul.mubr.bf16.vlgmr.msra.gmra.mrb[4].mxu1 %v754_v29 }
 0x25c   :  { %1229 = vmatpush3.bf16.msra.mxu1 %v1403_v31  ;;  %1244 = vmatprep.mubr.msk.bf16.mxu1 %vm1501_vm2, %v1500_v9 }
 0x25d   :  { %1230 = vmatprep.subr.bf16.mxu1 %v1500_v9 }
 0x260   :  { %1231 = vmatpush3.bf16.msra.mxu1 %v1404_v32 }
 0x261   :  { %1232 = vmatprep.subr.bf16.mxu1 %v1500_v9 }
 0x264   :  { %1233 = vmatpush3.bf16.msra.mxu1 %v1405_v34 }
 0x265   :  { %1234 = vmatprep.subr.bf16.mxu1 %v1500_v9 }
 0x268   :  { %1235 = vmatpush3.bf16.msra.mxu1 %v1406_v35 }
 0x269   :  { %1236 = vmatprep.subr.bf16.mxu1 %v1500_v9 }
 0x26c   :  { %1237 = vmatpush3.bf16.msra.mxu1 %v1407_v36 }
 0x26d   :  { %1238 = vmatprep.subr.bf16.mxu1 %v1500_v9 }
 0x270   :  { %1239 = vmatpush3.bf16.msra.mxu1 %v1408_v37 }
 0x271   :  { %1240 = vmatprep.subr.bf16.mxu1 %v1500_v9 }
 0x274   :  { %1241 = vmatpush3.bf16.msra.mxu1 %v1409_v38 }
 0x275   :  { %1242 = vmatprep.subr.bf16.mxu1 %v1500_v9 }
 0x278   :  { %1243 = vmatpush3.bf16.msra.mxu1 %v1410_v39 }
 0x32e   :  { %v1213_v40 = vpop.f32.mrb[4].mxu1 }
 0x32f   :  { %v1214_v42 = vpop.f32.mrb[5].mxu1 }
 0x330   :  { %v1215_v43 = vadd.f32 %v1214_v42, %v1213_v40  ;;  %v1216_v44 = vpop.f32.mrb[6].mxu1 }
 0x331   :  { %v1217_v45 = vpop.f32.mrb[7].mxu1 }
 0x332   :  { %v926_v46 = vadd.f32 %v1215_v43, %v1162_v41  ;;  %v1218_v47 = vadd.f32 %v1217_v45, %v1216_v44 }
 0x334   :  { %v929_v48 = vadd.f32 %v1218_v47, %v1162_v41  ;;  %1411 = vtanh.f32 %v926_v46 }
 0x336   :  { %1413 = vtanh.f32 %v929_v48 }
 0x33e   :  { %v1412_v49 = vpop.eup %1411 }
 0x340   :  { %v1414_v50 = vpop.eup %1413 }
 0x341   :  { %v934_v51 = vpack.c.bf16 %v1414_v50, %v1412_v49 }
 0x343   :  { %1245 = vmatmul.mubr.bf16.vlgmr.msra.gmra.mrb[8].mxu1 %v934_v51 }
 0x416   :  { %v1040_v53 = vpop.f32.mrb[8].mxu1 }
 0x417   :  { %v1041_v54 = vadd.f32 %v1179_v52, %v1040_v53  ;;  %v1246_v55 = vpop.f32.mrb[9].mxu1 }
 0x418   :  { %v1043_v56 = vpop.f32.mrb[10].mxu1 }
 0x419   :  { %v1047_v57 = vsub.f32 0.0, %v1041_v54  ;;  %v1044_v58 = vadd.f32 %v1179_v52, %v1043_v56  ;;  %v1247_v59 = vpop.f32.mrb[11].mxu1 }
 0x41b   :  { %v1049_v60 = vmul.f32 1.442695, %v1047_v57  ;;  %v1048_v61 = vsub.f32 0.0, %v1044_v58 }
 0x41d   :  { %1415 = vpow2.f32 %v1049_v60  ;;  %v1051_v62 = vmul.f32 1.442695, %v1048_v61 }
 0x41f   :  { %1417 = vpow2.f32 %v1051_v62 }
 0x427   :  { %v1416_v63 = vpop.eup %1415 }
 0x428   :  { %v1053_v0 = vadd.f32 1.0, %v1416_v63 }
 0x429   :  { %v1418_v1 = vpop.eup %1417 }
 0x42a   :  { %1419 = vrcp.f32 %v1053_v0  ;;  %v1054_v2 = vadd.f32 1.0, %v1418_v1 }
 0x42c   :  { %1421 = vrcp.f32 %v1054_v2 }
 0x434   :  { %v1420_v4 = vpop.eup %1419 }
 0x435   :  { %v1060_v6 = vsel %vm1059_vm3, %v1420_v4, %v1041_v54 }
 0x436   :  { %v1422_v5 = vpop.eup %1421 }
 0x437   :  { %v1061_v7 = vsel %vm1059_vm3, %v1422_v5, %v1044_v58 }
 0x438   :  { %v1195_v8 = vpack.c.bf16 %v1061_v7, %v1060_v6 }
 0x43a   :  { %1196 = vst [vmem:[%s1670_s9] sm:$0xff] %v1195_v8  }
 0x43b   :  { %1076 = vsyncpa [#allocation3], 1 }
 0x43c   :  { %1077 = vsyncpa [#allocation5], 1 }

</bundles_post_ra>
